<compile_context>
chip_gen: v7x
topology: tpu7x:2x2x1
jax: 0.10.0
libtpu: 0.0.40
codegen_flags: <defaults>
</compile_context>

<pallas_src>
import functools

import jax
import jax.numpy as jnp
import numpy as np
from jax import lax
from jax.experimental import pallas as pl
from jax.experimental.pallas import tpu as pltpu


def _round_up(x, m):
    return ((x + m - 1) // m) * m


def _masked_reduce_kernel(x_ref, y_ref, out_ref, *, mode, eps, total,
                          block_rows, needs_mask):
    """Per-tile sum of f(x - y), folded to a lane-resident (8, 128) block.

    f = sqrt(d^2 + eps^2) for mode=='charbonnier', |d| for mode=='l1'.
    """
    # Upcast in-register (DMA carried the native dtype).
    d = x_ref[...].astype(jnp.float32) - y_ref[...].astype(jnp.float32)
    if mode == "charbonnier":
        val = jnp.sqrt(d * d + jnp.float32(eps * eps))
    else:  # "l1"
        val = jnp.abs(d)

    if needs_mask:
        # Exact masking of the zero-padded tail (only compiled in when the
        # padded extent differs from `total` AND padding would change the sum).
        step = pl.program_id(0)
        row = lax.broadcasted_iota(jnp.int32, val.shape, 0)
        col = lax.broadcasted_iota(jnp.int32, val.shape, 1)
        gidx = (step * block_rows + row) * 128 + col
        val = jnp.where(gidx < total, val, jnp.float32(0.0))

    # Fold (block_rows, 128) -> (8, 128): sublane-aligned reshape + elementwise
    # vreg adds only (no XLU cross-lane work).
    out_ref[...] = val.reshape(block_rows // 8, 8, 128).sum(axis=0)


def _reduce_sum(x, y, *, mode, eps=0.0, block_rows=1024):
    """Sum of f(x - y) over all elements, computed with a Pallas kernel."""
    assert x.shape == y.shape, (x.shape, y.shape)
    total = int(np.prod(x.shape))
    assert total > 0

    xf = x.reshape(-1)
    yf = y.reshape(-1)

    rows_needed = -(-total // 128)                     # ceil(total / 128)
    br = min(block_rows, _round_up(rows_needed, 8))    # don't over-allocate tiny inputs
    br = _round_up(br, 8)                              # (8, 128) tiling constraint
    num_tiles = -(-rows_needed // br)
    padded = num_tiles * br * 128

    if padded != total:
        # One-off pad to a rectangular lane-dense slab (only hit for ragged
        # sizes; typical image/feature sizes divide evenly and skip this).
        xf = jnp.pad(xf, (0, padded - total))
        yf = jnp.pad(yf, (0, padded - total))

    x2 = xf.reshape(num_tiles * br, 128)
    y2 = yf.reshape(num_tiles * br, 128)

    # Padding is zeros; |0 - 0| = 0 contributes nothing, but Charbonnier would
    # add eps per padded element, so only then do we emit the in-kernel mask.
    needs_mask = (padded != total) and (mode == "charbonnier")

    kernel = functools.partial(
        _masked_reduce_kernel,
        mode=mode, eps=float(eps), total=total, block_rows=br,
        needs_mask=needs_mask,
    )

    partials = pl.pallas_call(
        kernel,
        out_shape=jax.ShapeDtypeStruct((num_tiles * 8, 128), jnp.float32),
        grid=(num_tiles,),
        in_specs=[
            pl.BlockSpec((br, 128), lambda i: (i, 0)),
            pl.BlockSpec((br, 128), lambda i: (i, 0)),
        ],
        out_specs=pl.BlockSpec((8, 128), lambda i: (i, 0)),
        compiler_params=pltpu.CompilerParams(
            dimension_semantics=("parallel",),
        ),
    )(x2, y2)

    # Tiny final cross-lane reduction in plain JAX.
    return jnp.sum(partials)


def charbonnier_loss(x, y, *, eps=1e-3):
    """mean( sqrt((x - y)^2 + eps^2) ) — CharbonnierLoss.forward."""
    total = int(np.prod(x.shape))
    return _reduce_sum(x, y, mode="charbonnier", eps=eps) / jnp.float32(total)


def l1_loss(x, y):
    """mean( |x - y| ) — torch.nn.functional.l1_loss (reduction='mean')."""
    total = int(np.prod(x.shape))
    return _reduce_sum(x, y, mode="l1") / jnp.float32(total)


def l1_and_perceptual_loss(inp, target, fake_features, real_features, *, gamma=0.1):
    """L1andPerceptualLoss.forward.

    fake_features / real_features stand in for VGG19 feature maps of the
    (ImageNet-normalized) input / target images.
    TODO(synk): the pretrained VGG19 backbone + Normalize transform are
                computed upstream; only the loss criteria run in Pallas here.
    """
    l1 = charbonnier_loss(inp, target, eps=1e-3)
    perceptual = l1_loss(fake_features, real_features)
    return l1 + jnp.float32(gamma) * perceptual


# ----------------------------- pure-JAX reference -----------------------------

def _charbonnier_ref(x, y, eps=1e-3):
    d = x.astype(jnp.float32) - y.astype(jnp.float32)
    return jnp.mean(jnp.sqrt(d * d + eps * eps))


def _l1_ref(x, y):
    return jnp.mean(jnp.abs(x.astype(jnp.float32) - y.astype(jnp.float32)))


def _loss_ref(inp, target, f_fake, f_real, gamma=0.1):
    return _charbonnier_ref(inp, target) + gamma * _l1_ref(f_fake, f_real)


if __name__ == "__main__":
    key = jax.random.PRNGKey(0)
    k1, k2, k3, k4 = jax.random.split(key, 4)

    # Images (N, C, H, W), as the PyTorch module expects.
    N, C, H, W = 2, 3, 16, 16
    inp = jax.random.uniform(k1, (N, C, H, W), dtype=jnp.float32)
    target = jax.random.uniform(k2, (N, C, H, W), dtype=jnp.float32)

    # Stand-in feature maps (would come from VGG19 layers 0..34 upstream).
    f_fake = jax.random.uniform(k3, (N, 32, 4, 4), dtype=jnp.float32)
    f_real = jax.random.uniform(k4, (N, 32, 4, 4), dtype=jnp.float32)

    out = l1_and_perceptual_loss(inp, target, f_fake, f_real, gamma=0.1)
    out = jax.block_until_ready(out)

    ref = _loss_ref(inp, target, f_fake, f_real, gamma=0.1)
    np.testing.assert_allclose(np.asarray(out), np.asarray(ref),
                               rtol=1e-5, atol=1e-5)

    # Also sanity-check the individual criteria.
    np.testing.assert_allclose(
        np.asarray(jax.block_until_ready(charbonnier_loss(inp, target))),
        np.asarray(_charbonnier_ref(inp, target)), rtol=1e-5, atol=1e-5)
    np.testing.assert_allclose(
        np.asarray(jax.block_until_ready(l1_loss(f_fake, f_real))),
        np.asarray(_l1_ref(f_fake, f_real)), rtol=1e-5, atol=1e-5)

    # Exercise a ragged size (forces the masked-Charbonnier tail path).
    k5, k6 = jax.random.split(k4)
    a = jax.random.uniform(k5, (3, 5, 7, 11), dtype=jnp.float32)
    b = jax.random.uniform(k6, (3, 5, 7, 11), dtype=jnp.float32)
    np.testing.assert_allclose(
        np.asarray(jax.block_until_ready(charbonnier_loss(a, b))),
        np.asarray(_charbonnier_ref(a, b)), rtol=1e-5, atol=1e-5)

    print("KERNEL_OK")
</pallas_src>

<mosaic_0001>
module attributes {stable_mosaic.version = 11 : i64} {
  func.func @_masked_reduce_kernel(%arg0: i32, %arg1: memref<16x128xf32, #tpu.memory_space<vmem>>, %arg2: memref<16x128xf32, #tpu.memory_space<vmem>>, %arg3: memref<8x128xf32, #tpu.memory_space<vmem>>) attributes {dimension_semantics = [#tpu.dimension_semantics<parallel>], iteration_bounds = array<i64: 1>, scalar_prefetch = 0 : i64, scratch_operands = 0 : i64, tpu.core_type = #tpu.core_type<tc>, window_params = [{transform_indices = @transform_0, window_bounds = array<i64: 16, 128>}, {transform_indices = @transform_1, window_bounds = array<i64: 16, 128>}, {transform_indices = @transform_2, window_bounds = array<i64: 8, 128>}]} {
    %c0 = arith.constant 0 : index
    %c0_0 = arith.constant 0 : index
    %0 = vector.load %arg1[%c0, %c0_0] : memref<16x128xf32, #tpu.memory_space<vmem>>, vector<16x128xf32>
    %c0_1 = arith.constant 0 : index
    %c0_2 = arith.constant 0 : index
    %1 = vector.load %arg2[%c0_1, %c0_2] : memref<16x128xf32, #tpu.memory_space<vmem>>, vector<16x128xf32>
    %2 = arith.subf %0, %1 : vector<16x128xf32>
    %3 = arith.mulf %2, %2 : vector<16x128xf32>
    %cst = arith.constant 9.99999997E-7 : f32
    %4 = vector.broadcast %cst : f32 to vector<16x128xf32>
    %5 = arith.addf %3, %4 : vector<16x128xf32>
    %6 = math.sqrt %5 : vector<16x128xf32>
    %7 = tpu.iota {dimensions = array<i32: 0>} : vector<16x128xi32>
    %8 = tpu.iota {dimensions = array<i32: 1>} : vector<16x128xi32>
    %c16_i32 = arith.constant 16 : i32
    %9 = arith.muli %arg0, %c16_i32 : i32
    %10 = vector.broadcast %9 : i32 to vector<16x128xi32>
    %11 = arith.addi %10, %7 : vector<16x128xi32>
    %c128_i32 = arith.constant 128 : i32
    %12 = vector.broadcast %c128_i32 : i32 to vector<16x128xi32>
    %13 = arith.muli %11, %12 : vector<16x128xi32>
    %14 = arith.addi %13, %8 : vector<16x128xi32>
    %c1536_i32 = arith.constant 1536 : i32
    %15 = vector.broadcast %c1536_i32 : i32 to vector<16x128xi32>
    %16 = arith.cmpi slt, %14, %15 : vector<16x128xi32>
    %cst_3 = arith.constant 0.000000e+00 : f32
    %17 = vector.broadcast %cst_3 : f32 to vector<16x128xf32>
    %18 = arith.select %16, %6, %17 : vector<16x128xi1>, vector<16x128xf32>
    %19 = vector.shape_cast %18 : vector<16x128xf32> to vector<2x8x128xf32>
    %cst_4 = arith.constant dense<0.000000e+00> : vector<8x128xf32>
    %20 = vector.multi_reduction <add>, %19, %cst_4 [0] : vector<2x8x128xf32> to vector<8x128xf32>
    %c0_5 = arith.constant 0 : index
    %c0_6 = arith.constant 0 : index
    %21 = vector.load %arg3[%c0_5, %c0_6] : memref<8x128xf32, #tpu.memory_space<vmem>>, vector<8x128xf32>
    tpu.vector_store %arg3[%c0_5, %c0_6], %20 {strides = array<i32>} : memref<8x128xf32, #tpu.memory_space<vmem>>, vector<8x128xf32>,
    return
  }
  func.func @transform_0(%arg0: i32) -> (i32, i32) {
    %c0_i32 = arith.constant 0 : i32
    %c0_i32_0 = arith.constant 0 : i32
    return %arg0, %c0_i32 : i32, i32
  }
  func.func @transform_1(%arg0: i32) -> (i32, i32) {
    %c0_i32 = arith.constant 0 : i32
    %c0_i32_0 = arith.constant 0 : i32
    return %arg0, %c0_i32 : i32, i32
  }
  func.func @transform_2(%arg0: i32) -> (i32, i32) {
    %c0_i32 = arith.constant 0 : i32
    %c0_i32_0 = arith.constant 0 : i32
    return %arg0, %c0_i32 : i32, i32
  }
}

</mosaic_0001>

<bundles_post_ra>
// kernel: tpu_custom_call.1
= control target key start
LH: loop header
LB: loop body
LE: loop exit
PB: predicated region body
PF: predicated region fallthrough
CT: control target
= control target key end

     0   :  { %7 = vsyncpa [#allocation3], 0  ;;  %s236_s0 = inlined_call_operand.hbm [shape: f32[16,128], index: 0, kind: input, shape index: {}]   ;;  %s237_s1 = inlined_call_operand.hbm [shape: f32[16,128], index: 1, kind: input, shape index: {}]   ;;  %s238_s2 = inlined_call_operand.hbm [shape: f32[8,128], index: 2, kind: output, shape index: {}]  }
   0x1   :  { %8 = vsyncpa [#allocation6], 0 }
   0x2   :  { %9 = vsyncpa [#allocation4], 0  ;;  %s180_s9 = smov [#allocation2]   ;;  %s108_s13 = scalar_lea.hbm %s236_s0, 256 }
   0x3   :  { %s15_s10 = sshll.u32 %s180_s9, 4  ;;  %p109_p0 = scmp.ne.s32.totalorder %s236_s0, %s108_s13  ;;  %s16_s10 = int_to_ptr.vmem [resolvable:$true] %s15_s10 }
   0x4   :  { %p112_p1 = scmp.lt.u32.totalorder %s108_s13, %s236_s0 }
   0x6   :  { %p114_p2 = pnand %p112_p1, %p109_p0 }
   0x8   :  { %117 = shalt.err (!%p114_p2)
}
   0x9   :  { %s118_s18 = scalar_lea.vmem %s16_s10, 256  ;;  %p123_p4 = scmp.lt.s32.totalorder %s16_s10, %s16_s10 }
   0xa   :  { %p119_p3 = scmp.ne.s32.totalorder %s16_s10, %s118_s18  ;;  %p124_p5 = scmp.lt.s32.totalorder %s118_s18, %s118_s18 }
   0xc   :  { %p125_p6 = por %p124_p5, %p123_p4 }
   0xe   :  { %p126_p7 = pnand %p125_p6, %p119_p3 }
  0x10   :  { %129 = shalt.err (!%p126_p7)
}
  0x11   :  { %s181_s19 = smov 128   ;;  %s182_s20 = smov 8  }
  0x12   :  { %21 = dma.hbm_to_vmem [thread:$0]  %s236_s0, 256, %s16_s10, [#allocation3], %s181_s19, %s181_s19, %s182_s20  }
  0x13   :  { %s183_s23 = smov [#allocation5]   ;;  %s130_s27 = scalar_lea.hbm %s237_s1, 256 }
  0x14   :  { %s27_s24 = sshll.u32 %s183_s23, 4  ;;  %p131_p8 = scmp.ne.s32.totalorder %s237_s1, %s130_s27  ;;  %s28_s24 = int_to_ptr.vmem [resolvable:$true] %s27_s24 }
  0x15   :  { %p134_p9 = scmp.lt.u32.totalorder %s130_s27, %s237_s1 }
  0x17   :  { %p136_p10 = pnand %p134_p9, %p131_p8 }
  0x19   :  { %139 = shalt.err (!%p136_p10)
}
  0x1a   :  { %s140_s4 = scalar_lea.vmem %s28_s24, 256  ;;  %p145_p12 = scmp.lt.s32.totalorder %s28_s24, %s28_s24 }
  0x1b   :  { %p141_p11 = scmp.ne.s32.totalorder %s28_s24, %s140_s4  ;;  %p146_p13 = scmp.lt.s32.totalorder %s140_s4, %s140_s4 }
  0x1d   :  { %p147_p0 = por %p146_p13, %p145_p12 }
  0x1f   :  { %p148_p1 = pnand %p147_p0, %p141_p11 }
  0x21   :  { %151 = shalt.err (!%p148_p1)
}
  0x22   :  { %33 = dma.hbm_to_vmem [thread:$0]  %s237_s1, 256, %s28_s24, [#allocation6], %s181_s19, %s181_s19, %s182_s20  }
  0x23   :  { %174 = dma.done.wait [#allocation3], 256  }
  0x24   :  { %175 = vsyncadd [#allocation3], 4294967040 }
  0x25   :  { %176 = dma.done.wait [#allocation6], 256  }
  0x26   :  { %177 = vsyncadd [#allocation6], 4294967040  ;;  %v40_v0 = vld [vmem:[#allocation2] sm:$0xff]  ;;  %v41_v1 = vld [vmem:[#allocation2 + $0x8] sm:$0xff]  ;;  %v64_v3 = vlaneseq  ;;  %s184_s1 = smov [#allocation7]  }
  0x27   :  { %v42_v2 = vld [vmem:[#allocation5] sm:$0xff]  ;;  %v43_v4 = vld [vmem:[#allocation5 + $0x8] sm:$0xff]  ;;  %s89_s6 = sshll.u32 %s184_s1, 4  ;;  %s90_s6 = int_to_ptr.vmem [resolvable:$true] %s89_s6 }
  0x28   :  { %v44_v5 = vsub.f32 %v40_v0, %v42_v2  ;;  %v45_v6 = vsub.f32 %v41_v1, %v43_v4  ;;  %v65_v9 = vshrl.u32 %v64_v3, 7  ;;  %v68_v13 = vand.u32 127, %v64_v3  ;;  %s152_s7 = scalar_lea.vmem %s90_s6, 128  ;;  %p157_p3 = scmp.lt.s32.totalorder %s90_s6, %s90_s6 }
  0x29   :  { %p153_p2 = scmp.ne.s32.totalorder %s90_s6, %s152_s7  ;;  %p158_p4 = scmp.lt.s32.totalorder %s152_s7, %s152_s7 }
  0x2a   :  { %v46_v7 = vmul.f32 %v44_v5, %v44_v5  ;;  %v47_v8 = vmul.f32 %v45_v6, %v45_v6  ;;  %v66_v12 = vadd.s32 8, %v65_v9  ;;  %v73_v14 = vmul.u32 128, %v65_v9 }
  0x2b   :  { %p159_p5 = por %p158_p4, %p157_p3 }
  0x2c   :  { %v48_v10 = vadd.f32 1e-06, %v46_v7  ;;  %v49_v11 = vadd.f32 1e-06, %v47_v8  ;;  %v74_v15 = vmul.u32 128, %v66_v12  ;;  %v75_v16 = vadd.s32 %v73_v14, %v68_v13 }
  0x2d   :  { %p160_p6 = pnand %p159_p5, %p153_p2 }
  0x2e   :  { %104 = vrsqrt.f32 %v48_v10  ;;  %v76_v17 = vadd.s32 %v74_v15, %v68_v13  ;;  %vm52_vm0 = vcmp.eq.f32.partialorder %v48_v10, inf  ;;  %v55_v19 = vand.u32 2147483648, %v48_v10 }
  0x2f   :  { %106 = vrsqrt.f32 %v49_v11  ;;  %vm54_vm1 = vcmp.eq.f32.partialorder %v48_v10, 0.0  ;;  %vm59_vm2 = vcmp.eq.f32.partialorder %v49_v11, inf  ;;  %v62_v22 = vand.u32 2147483648, %v49_v11 }
  0x30   :  { %vm61_vm3 = vcmp.eq.f32.partialorder %v49_v11, 0.0  ;;  %vm77_vm4 = vcmp.lt.s32.totalorder %v75_v16, 1536  ;;  %vm78_vm5 = vcmp.lt.s32.totalorder %v76_v17, 1536 }
  0x38   :  { %v105_v18 = vpop.eup %104 }
  0x39   :  { %v107_v20 = vpop.eup %106  ;;  %v51_v21 = vmul.f32 %v105_v18, %v48_v10 }
  0x3a   :  { %v58_v23 = vmul.f32 %v107_v20, %v49_v11 }
  0x3b   :  { %v53_v24 = vsel %vm52_vm0, %v48_v10, %v51_v21 }
  0x3c   :  { %v56_v25 = vsel %vm54_vm1, %v55_v19, %v53_v24  ;;  %v60_v26 = vsel %vm59_vm2, %v49_v11, %v58_v23 }
  0x3d   :  { %v63_v27 = vsel %vm61_vm3, %v62_v22, %v60_v26  ;;  %v79_v28 = vsel %vm77_vm4, %v56_v25, 0.0 }
  0x3e   :  { %v80_v29 = vsel %vm78_vm5, %v63_v27, 0.0 }
  0x3f   :  { %v81_v30 = vadd.f32 %v80_v29, %v79_v28 }
  0x41   :  { %82 = vst [vmem:[#allocation7] sm:$0xff] %v81_v30 }
  0x42   :  { %163 = shalt.err (!%p160_p6)
}
  0x43   :  { %s164_s10 = scalar_lea.hbm %s238_s2, 128 }
  0x44   :  { %p165_p7 = scmp.ne.s32.totalorder %s238_s2, %s164_s10  ;;  %p168_p8 = scmp.lt.u32.totalorder %s164_s10, %s238_s2 }
  0x46   :  { %p170_p9 = pnand %p168_p8, %p165_p7 }
  0x48   :  { %173 = shalt.err (!%p170_p9)
}
  0x49   :  { %92 = dma.vmem_to_hbm [thread:$0]  %s90_s6, 128, %s238_s2, [#allocation4]  }
  0x4a   :  { %178 = dma.done.wait [#allocation4], 128  }
  0x4b   :  { %179 = vsyncadd [#allocation4], 4294967168 }
  0x4c   :  { %96 = vsyncpa [#allocation3], 1 }
  0x4d   :  { %97 = vsyncpa [#allocation6], 1 }
  0x4e   :  { %98 = vsyncpa [#allocation4], 1 }

</bundles_post_ra>
